<compile_context>
chip_gen: v7x
topology: tpu7x:2x2x1
jax: 0.10.0
libtpu: 0.0.40
codegen_flags: <defaults>
</compile_context>

<pallas_src>
import functools
import math

import jax
import jax.numpy as jnp
import numpy as np
from jax import lax
from jax.experimental import pallas as pl
from jax.experimental.pallas import tpu as pltpu


# ---------------------------------------------------------------------------
# Helpers
# ---------------------------------------------------------------------------
def _round_up(x, m):
    return ((x + m - 1) // m) * m


def _apply_activation(y, activation):
    # Static (trace-time) selection, mirroring the module constructor.
    if activation == "tanh":
        return jnp.tanh(y)
    if activation == "relu":
        return jnp.maximum(y, 0.0)
    if activation == "sigmoid":
        return jax.nn.sigmoid(y)
    if activation == "siLu":
        return y * jax.nn.sigmoid(y)
    if activation == "softmax":
        return jax.nn.softmax(y, axis=-1)
    return y  # module appends no activation layer


# ---------------------------------------------------------------------------
# Fused cascade kernel: y = LN(act(... LN(act(x @ W0 + b0)) ... @ Wl + bl))
# ---------------------------------------------------------------------------
def _fused_mlp_kernel(x_ref, *refs, num_layers, activation, layer_norm, eps,
                      mxu_dtype):
    """refs = (w_0, p_0, w_1, p_1, ..., o_ref).

    x_ref : (TM, Din0) streamed row tile.
    w_l   : (Din_l, Dout_l) resident, already in the MXU operand dtype.
    p_l   : (3, Dout_l) resident f32 — rows: bias, LN gamma, LN beta.
    """
    o_ref = refs[-1]
    y = x_ref[...]
    if mxu_dtype is None:
        y = y.astype(jnp.float32)

    for l in range(num_layers):          # static unroll over the cascade
        w_ref = refs[2 * l]
        p_ref = refs[2 * l + 1]

        lhs = y.astype(mxu_dtype) if mxu_dtype is not None else y
        # Canonical (M,K)x(K,N) MXU contraction, f32 accumulation.
        y = jnp.dot(lhs, w_ref[...], preferred_element_type=jnp.float32)
        y = y + p_ref[0:1, :]                       # bias
        y = _apply_activation(y, activation)        # f32 VPU/EUP epilogue

        if layer_norm:
            mean = jnp.mean(y, axis=-1, keepdims=True)
            var = jnp.mean(jnp.square(y - mean), axis=-1, keepdims=True)
            y = (y - mean) * lax.rsqrt(var + eps)
            y = y * p_ref[1:2, :] + p_ref[2:3, :]   # gamma / beta

    o_ref[...] = y.astype(o_ref.dtype)


def _pick_block_rows(n, d_in, layer_dims, in_itemsize, out_itemsize,
                     vmem_tile_budget=20 << 20):
    """Largest row tile such that double-buffered streamed tiles plus the
    in-kernel f32 intermediate working set stay under the VMEM budget
    (resident weights are tiny), rounded to 16 rows, capped at 4096 rows.
    Keeps the grid >= 2 when possible so ("parallel",) can use both v7x TCs."""
    max_h = max([d_in] + list(layer_dims))
    d_out = layer_dims[-1]
    bytes_per_row = (2 * d_in * in_itemsize      # double-buffered x tile
                     + 2 * d_out * out_itemsize  # double-buffered out tile
                     + 2 * max_h * 4)            # f32 intermediates
    tm_cap = vmem_tile_budget // max(bytes_per_row, 1)
    tm_cap = max(16, min(4096, (tm_cap // 16) * 16))
    if n > tm_cap:
        return tm_cap
    if n >= 64:
        tm = min(tm_cap, _round_up(pl.cdiv(n, 2), 16))
        if tm < n:                       # split into >=2 tiles for megacore
            return tm
    return n                             # single full-extent tile


# ---------------------------------------------------------------------------
# Wrapper: whole MLP cascade in one pallas_call
# ---------------------------------------------------------------------------
def mlp_forward_fused(x, params, *, activation="tanh", layer_norm=True,
                      eps=1e-5, mxu_dtype=jnp.bfloat16, block_rows=None,
                      vmem_tile_budget=20 << 20):
    """x: (N, Din). params: list of (w, b, gamma, beta) with PyTorch weight
    layout (Dout, Din). Returns (N, Dout_last) in x.dtype."""
    n, d_in = x.shape
    layer_dims = [int(w.shape[0]) for (w, _, _, _) in params]
    num_layers = len(params)
    d_out = layer_dims[-1]

    # One-time wrapper-side weight prep: transpose to (Din, Dout) and cast to
    # the MXU operand dtype so resident tiles are never re-cast in the loop.
    w_dtype = jnp.float32 if mxu_dtype is None else mxu_dtype
    weights = [w.T.astype(w_dtype) for (w, _, _, _) in params]
    # Pack bias / gamma / beta into one resident (3, Dout) f32 operand.
    packed = [jnp.stack([b, g, bt]).astype(jnp.float32)
              for (_, b, g, bt) in params]

    if block_rows is None:
        tm = _pick_block_rows(n, d_in, layer_dims,
                              x.dtype.itemsize, x.dtype.itemsize,
                              vmem_tile_budget)
    else:
        tm = min(block_rows, n)
        if tm != n:
            tm = max(16, (tm // 16) * 16)
    grid = (pl.cdiv(n, tm),)

    kernel = functools.partial(
        _fused_mlp_kernel, num_layers=num_layers, activation=activation,
        layer_norm=layer_norm, eps=eps, mxu_dtype=mxu_dtype)

    in_specs = [pl.BlockSpec((tm, d_in), lambda i: (i, 0))]      # streamed rows
    dims_in = [d_in] + layer_dims[:-1]
    for di, do in zip(dims_in, layer_dims):
        in_specs.append(pl.BlockSpec((di, do), lambda i: (0, 0)))  # weight
        in_specs.append(pl.BlockSpec((3, do), lambda i: (0, 0)))   # b/gamma/beta
    out_specs = pl.BlockSpec((tm, d_out), lambda i: (i, 0))        # lane-dense

    # Advisory cost estimate for XLA's scheduler.
    flops = 2 * n * sum(di * do for di, do in zip(dims_in, layer_dims))
    transcendentals = 0
    if activation in ("tanh", "sigmoid", "siLu", "softmax"):
        transcendentals += n * sum(layer_dims)
    if layer_norm:
        transcendentals += n * num_layers                 # one rsqrt per row
    bytes_accessed = (int(x.size) * x.dtype.itemsize
                      + n * d_out * x.dtype.itemsize
                      + sum(int(w.size) * w.dtype.itemsize for w in weights)
                      + sum(int(p.size) * p.dtype.itemsize for p in packed))

    operands = [x]
    for w, p in zip(weights, packed):
        operands.extend((w, p))

    return pl.pallas_call(
        kernel,
        out_shape=jax.ShapeDtypeStruct((n, d_out), x.dtype),
        grid=grid,
        in_specs=in_specs,
        out_specs=out_specs,
        compiler_params=pltpu.CompilerParams(
            dimension_semantics=("parallel",),       # megacore row sharding
            vmem_limit_bytes=32 * 1024 * 1024,       # safe on v5e..v7x
        ),
        cost_estimate=pl.CostEstimate(
            flops=int(flops),
            transcendentals=int(transcendentals),
            bytes_accessed=int(bytes_accessed)),
    )(*operands)


# ---------------------------------------------------------------------------
# Module mirror: constructor width logic + parameter construction
# ---------------------------------------------------------------------------
def next_power_of_two(n):
    return 2 ** math.ceil(math.log2(n))


def build_mlp_params(key, input_dim, output_dim, num_layers=1):
    """Mirror of MLP.__init__'s layer-width derivation; returns per-layer
    (w, b, gamma, beta) with PyTorch weight layout (out, in)."""
    dims = [input_dim]
    if input_dim <= output_dim:
        dims += [output_dim] * num_layers
    else:
        step_ratio = (output_dim / input_dim) ** (1.0 / num_layers)
        for i in range(1, num_layers):
            dims.append(next_power_of_two(input_dim * step_ratio ** i))
        dims.append(output_dim)

    params = []
    for d_in, d_out in zip(dims[:-1], dims[1:]):
        key, kw, kb, kg, kbt = jax.random.split(key, 5)
        bound = 1.0 / math.sqrt(d_in)
        w = jax.random.uniform(kw, (d_out, d_in), jnp.float32, -bound, bound)
        b = jax.random.uniform(kb, (d_out,), jnp.float32, -bound, bound)
        gamma = 1.0 + 0.1 * jax.random.normal(kg, (d_out,), jnp.float32)
        beta = 0.1 * jax.random.normal(kbt, (d_out,), jnp.float32)
        params.append((w, b, gamma, beta))
    return params


# ---------------------------------------------------------------------------
# Pure-JAX reference for validation
# ---------------------------------------------------------------------------
def ref_mlp_forward(x, params, *, activation="tanh", layer_norm=True, eps=1e-5):
    for (w, b, gamma, beta) in params:
        y = x @ w.T + b
        y = _apply_activation(y, activation)
        if layer_norm:
            mean = jnp.mean(y, axis=-1, keepdims=True)
            var = jnp.mean(jnp.square(y - mean), axis=-1, keepdims=True)
            y = (y - mean) / jnp.sqrt(var + eps) * gamma + beta
        x = y
    return x


if __name__ == "__main__":
    key = jax.random.PRNGKey(0)
    k_in1, k_in2, k_p1, k_p2 = jax.random.split(key, 4)

    # Config 1: default module config (input_dim <= output_dim, num_layers=1,
    # activation='tanh', layer_norm=True) -> Linear(32,64) + Tanh + LN(64).
    x1 = jax.random.normal(k_in1, (256, 32), jnp.float32)
    params1 = build_mlp_params(k_p1, input_dim=32, output_dim=64, num_layers=1)

    # Config 2: descending widths (input_dim > output_dim, num_layers=2)
    # -> Linear(256,128)+Tanh+LN(128), Linear(128,32)+Tanh+LN(32).
    # N=1000 exercises a partial final row tile.
    x2 = jax.random.normal(k_in2, (1000, 256), jnp.float32)
    params2 = build_mlp_params(k_p2, input_dim=256, output_dim=32, num_layers=2)

    ref1 = ref_mlp_forward(x1, params1, activation="tanh")
    ref2 = ref_mlp_forward(x2, params2, activation="tanh")

    # Full-f32 MXU path: tight tolerance.
    out1 = jax.block_until_ready(
        mlp_forward_fused(x1, params1, activation="tanh", mxu_dtype=None))
    np.testing.assert_allclose(np.asarray(out1), np.asarray(ref1),
                               rtol=2e-4, atol=2e-5)

    out2 = jax.block_until_ready(
        mlp_forward_fused(x2, params2, activation="tanh", mxu_dtype=None))
    np.testing.assert_allclose(np.asarray(out2), np.asarray(ref2),
                               rtol=2e-4, atol=2e-5)

    # Default fast path: bf16 MXU operands, f32 accumulation + f32 epilogue.
    out1_fast = jax.block_until_ready(
        mlp_forward_fused(x1, params1, activation="tanh"))
    np.testing.assert_allclose(np.asarray(out1_fast), np.asarray(ref1),
                               rtol=5e-2, atol=5e-2)

    out2_fast = jax.block_until_ready(
        mlp_forward_fused(x2, params2, activation="tanh"))
    np.testing.assert_allclose(np.asarray(out2_fast), np.asarray(ref2),
                               rtol=5e-2, atol=5e-2)

    print("KERNEL_OK")
</pallas_src>

<mosaic_0001>
module attributes {stable_mosaic.version = 11 : i64} {
  func.func @_fused_mlp_kernel(%arg0: i32, %arg1: memref<128x32xf32, #tpu.memory_space<vmem>>, %arg2: memref<32x64xf32, #tpu.memory_space<vmem>>, %arg3: memref<3x64xf32, #tpu.memory_space<vmem>>, %arg4: memref<128x64xf32, #tpu.memory_space<vmem>>) attributes {dimension_semantics = [#tpu.dimension_semantics<parallel>], iteration_bounds = array<i64: 2>, scalar_prefetch = 0 : i64, scratch_operands = 0 : i64, tpu.core_type = #tpu.core_type<tc>, window_params = [{transform_indices = @transform_0, window_bounds = array<i64: 128, 32>}, {pipeline_mode = #tpu.pipeline_mode<synchronous>, transform_indices = @transform_1, window_bounds = array<i64: 32, 64>}, {pipeline_mode = #tpu.pipeline_mode<synchronous>, transform_indices = @transform_2, window_bounds = array<i64: 3, 64>}, {transform_indices = @transform_3, window_bounds = array<i64: 128, 64>}]} {
    %c0 = arith.constant 0 : index
    %c0_0 = arith.constant 0 : index
    %0 = vector.load %arg1[%c0, %c0_0] : memref<128x32xf32, #tpu.memory_space<vmem>>, vector<128x32xf32>
    %c0_1 = arith.constant 0 : index
    %c0_2 = arith.constant 0 : index
    %1 = vector.load %arg2[%c0_1, %c0_2] : memref<32x64xf32, #tpu.memory_space<vmem>>, vector<32x64xf32>
    %cst = arith.constant dense<0.000000e+00> : vector<128x64xf32>
    %2 = tpu.matmul %0, %1, %cst {dimension_numbers = #tpu.dot_dimension_numbers<[1], [0], [0], [1], [0, 0, 1, 1], [], []>} : vector<128x32xf32>, vector<32x64xf32>, vector<128x64xf32> -> vector<128x64xf32>
    %c0_3 = arith.constant 0 : index
    %c0_4 = arith.constant 0 : index
    %3 = vector.load %arg3[%c0_3, %c0_4] : memref<3x64xf32, #tpu.memory_space<vmem>>, vector<1x64xf32>
    %4 = vector.broadcast %3 : vector<1x64xf32> to vector<128x64xf32>
    %5 = arith.addf %2, %4 : vector<128x64xf32>
    %6 = math.tanh %5 : vector<128x64xf32>
    %cst_5 = arith.constant dense<0.000000e+00> : vector<128xf32>
    %7 = vector.multi_reduction <add>, %6, %cst_5 [1] : vector<128x64xf32> to vector<128xf32>
    %8 = vector.shape_cast %7 : vector<128xf32> to vector<128x1xf32>
    %cst_6 = arith.constant 6.400000e+01 : f32
    %9 = vector.broadcast %cst_6 : f32 to vector<128x1xf32>
    %10 = arith.divf %8, %9 : vector<128x1xf32>
    %11 = vector.broadcast %10 : vector<128x1xf32> to vector<128x64xf32>
    %12 = arith.subf %6, %11 : vector<128x64xf32>
    %13 = arith.mulf %12, %12 : vector<128x64xf32>
    %cst_7 = arith.constant dense<0.000000e+00> : vector<128xf32>
    %14 = vector.multi_reduction <add>, %13, %cst_7 [1] : vector<128x64xf32> to vector<128xf32>
    %15 = vector.shape_cast %14 : vector<128xf32> to vector<128x1xf32>
    %cst_8 = arith.constant 6.400000e+01 : f32
    %16 = vector.broadcast %cst_8 : f32 to vector<128x1xf32>
    %17 = arith.divf %15, %16 : vector<128x1xf32>
    %18 = vector.broadcast %10 : vector<128x1xf32> to vector<128x64xf32>
    %19 = arith.subf %6, %18 : vector<128x64xf32>
    %cst_9 = arith.constant 9.99999974E-6 : f32
    %20 = vector.broadcast %cst_9 : f32 to vector<128x1xf32>
    %21 = arith.addf %17, %20 : vector<128x1xf32>
    %22 = math.rsqrt %21 : vector<128x1xf32>
    %23 = vector.broadcast %22 : vector<128x1xf32> to vector<128x64xf32>
    %24 = arith.mulf %19, %23 : vector<128x64xf32>
    %c1 = arith.constant 1 : index
    %c0_10 = arith.constant 0 : index
    %25 = vector.load %arg3[%c1, %c0_10] : memref<3x64xf32, #tpu.memory_space<vmem>>, vector<1x64xf32>
    %26 = vector.broadcast %25 : vector<1x64xf32> to vector<128x64xf32>
    %27 = arith.mulf %24, %26 : vector<128x64xf32>
    %c2 = arith.constant 2 : index
    %c0_11 = arith.constant 0 : index
    %28 = vector.load %arg3[%c2, %c0_11] : memref<3x64xf32, #tpu.memory_space<vmem>>, vector<1x64xf32>
    %29 = vector.broadcast %28 : vector<1x64xf32> to vector<128x64xf32>
    %30 = arith.addf %27, %29 : vector<128x64xf32>
    %c0_12 = arith.constant 0 : index
    %c0_13 = arith.constant 0 : index
    %31 = vector.load %arg4[%c0_12, %c0_13] : memref<128x64xf32, #tpu.memory_space<vmem>>, vector<128x64xf32>
    tpu.vector_store %arg4[%c0_12, %c0_13], %30 {strides = array<i32>} : memref<128x64xf32, #tpu.memory_space<vmem>>, vector<128x64xf32>,
    return
  }
  func.func @transform_0(%arg0: i32) -> (i32, i32) {
    %c0_i32 = arith.constant 0 : i32
    %c0_i32_0 = arith.constant 0 : i32
    return %arg0, %c0_i32 : i32, i32
  }
  func.func @transform_1(%arg0: i32) -> (i32, i32) {
    %c0_i32 = arith.constant 0 : i32
    %c0_i32_0 = arith.constant 0 : i32
    %c0_i32_1 = arith.constant 0 : i32
    return %c0_i32, %c0_i32_0 : i32, i32
  }
  func.func @transform_2(%arg0: i32) -> (i32, i32) {
    %c0_i32 = arith.constant 0 : i32
    %c0_i32_0 = arith.constant 0 : i32
    %c0_i32_1 = arith.constant 0 : i32
    return %c0_i32, %c0_i32_0 : i32, i32
  }
  func.func @transform_3(%arg0: i32) -> (i32, i32) {
    %c0_i32 = arith.constant 0 : i32
    %c0_i32_0 = arith.constant 0 : i32
    return %arg0, %c0_i32 : i32, i32
  }
}

</mosaic_0001>

<bundles_post_ra>
// kernel: tpu_custom_call.1
= control target key start
LH: loop header
LB: loop body
LE: loop exit
PB: predicated region body
PF: predicated region fallthrough
CT: control target
= control target key end

     0   :  { %s927_s12 = smov 0   ;;  %s1270_s0 = inlined_call_operand.vmem [shape: f32[256,32], index: 0, kind: input, shape index: {}]   ;;  %s1271_s1 = inlined_call_operand.vmem [shape: f32[32,64], index: 1, kind: input, shape index: {}]   ;;  %s1272_s2 = inlined_call_operand.vmem [shape: f32[3,64], index: 2, kind: input, shape index: {}]   ;;  %s1273_s3 = inlined_call_operand.vmem [shape: f32[256,64], index: 3, kind: output, shape index: {}]  }
   0x1 LB: > { %s733_s13 = sadd.s32 4294967295, %s905_s12   ;;  %p737_p0 = scmp.ge.s32.totalorder %s905_s12, 1  ;;  %s905_s12 = sphi %s927_s12, %s13_s12  }
   0x2   : > { %p138_p1 = scmp.lt.s32.totalorder %s905_s12, 3 }
   0x4   : > { %p139_p2 = pnand %p737_p0, %p138_p1 }
   0x5   : > { %v190_v0 = vld [vmem:[%s1271_s1] sm:$0xff] (!%p139_p2)  ;;  %v191_v1 = vld [vmem:[%s1271_s1 + $0x8] sm:$0xff] (!%p139_p2)  ;;  %v192_v2 = vld [vmem:[%s1271_s1 + $0x10] sm:$0xff] (!%p139_p2)  ;;  %s738_s20 = sshll.u32 (!%p139_p2), %s733_s13, 4  ;;  %vm199_vm0 = vcmask (!%p139_p2), 261120   ;;  %vm409_vm1 = vcmask (!%p139_p2), 523264  }
   0x6   : > { %142 = sbr.rel (%p139_p2) target bundleno = 591 (0x24f), region = 32  ;;  %v815_v3 = vpack.c.bf16 (!%p139_p2), %v191_v1, %v190_v0  ;;  %v193_v4 = vld [vmem:[%s1271_s1 + $0x18] sm:$0xff] (!%p139_p2)  ;;  %p163_p3 = scmp.lt.s32.totalorder (!%p139_p2), %s738_s20, 31  ;;  %v992_v22 = vld [vmem:[%s1272_s2] ss:$0 sm:$0xff] (!%p139_p2) }
   0x7   : > { %v819_v5 = vpack.c.bf16 (!%p139_p2), %v193_v4, %v192_v2 }
   0x8   : > { %816 = vmatprep.subr.bf16.mxu0 (!%p139_p2), %v815_v3  ;;  %823 = vmatprep.subr.bf16.mxu1 (!%p139_p2), %v815_v3 }
   0x9   : > { %818 = vmatpush3.bf16.msra.mxu0 (!%p139_p2), %v815_v3  ;;  %825 = vmatpush3.bf16.msra.mxu1 (!%p139_p2), %v815_v3 }
   0xa   : > { %820 = vmatprep.subr.bf16.mxu0 (!%p139_p2), %v819_v5  ;;  %824 = vmatprep.subr.bf16.mxu1 (!%p139_p2), %v819_v5 }
   0xd   : > { %s1275_s20 = smov (!%p163_p3, %s738_s20), 31  ;;  %822 = vmatpush3.bf16.msra.mxu0 %v819_v5  ;;  %826 = vmatpush3.bf16.msra.mxu1 %v819_v5 }
   0xe   : > { %s739_s23 = sshll.u32 %s1275_s20, 3 }
   0xf   : > { %s955_s26 = scalar_lea.vmem %s1270_s0, %s739_s23  ;;  %s1187_s8 = scalar_lea.vmem %s1273_s3, %s739_s23 }
  0x10   : > { %v174_v6 = vld [vmem:[%s955_s26] sm:$0xff]  ;;  %v175_v8 = vld [vmem:[%s955_s26 + $0x8] sm:$0xff]  ;;  %v176_v10 = vld [vmem:[%s955_s26 + $0x10] sm:$0xff] }
  0x11   : > { %v182_v7 = vld [vmem:[%s955_s26 + $0x40] sm:$0xff]  ;;  %v183_v9 = vld [vmem:[%s955_s26 + $0x48] sm:$0xff]  ;;  %791 = vmatprep.mubr.msk.f32.mxu0 %vm199_vm0, %v174_v6  ;;  %v184_v11 = vld [vmem:[%s955_s26 + $0x50] sm:$0xff] }
  0x12   : > { %803 = vmatprep.mubr.msk.f32.mxu1 %vm199_vm0, %v182_v7  ;;  %792 = vmatmul.mubr.msk.f32.vlgmr.msra.gmra.mrb[0].mxu0 %vm199_vm0, %v175_v8  ;;  %v177_v12 = vld [vmem:[%s955_s26 + $0x18] sm:$0xff]  ;;  %v178_v14 = vld [vmem:[%s955_s26 + $0x20] sm:$0xff]  ;;  %v179_v16 = vld [vmem:[%s955_s26 + $0x28] sm:$0xff] }
  0x13   : > { %804 = vmatmul.mubr.msk.f32.vlgmr.msra.gmra.mrb[0].mxu1 %vm199_vm0, %v183_v9  ;;  %794 = vmatprep.mubr.msk.f32.mxu0 %vm199_vm0, %v176_v10  ;;  %v185_v13 = vld [vmem:[%s955_s26 + $0x58] sm:$0xff]  ;;  %v186_v15 = vld [vmem:[%s955_s26 + $0x60] sm:$0xff]  ;;  %v187_v17 = vld [vmem:[%s955_s26 + $0x68] sm:$0xff] }
  0x14   : > { %806 = vmatprep.mubr.msk.f32.mxu1 %vm199_vm0, %v184_v11  ;;  %v180_v18 = vld [vmem:[%s955_s26 + $0x30] sm:$0xff]  ;;  %v181_v20 = vld [vmem:[%s955_s26 + $0x38] sm:$0xff] }
  0x15   : > { %v188_v19 = vld [vmem:[%s955_s26 + $0x70] sm:$0xff]  ;;  %v189_v21 = vld [vmem:[%s955_s26 + $0x78] sm:$0xff] }
  0x16   : > { %795 = vmatmul.mubr.msk.f32.gmra.mrb[2].mxu0 %vm199_vm0, %v177_v12 }
  0x17   : > { %807 = vmatmul.mubr.msk.f32.gmra.mrb[2].mxu1 %vm199_vm0, %v185_v13  ;;  %797 = vmatprep.mubr.msk.f32.mxu0 %vm199_vm0, %v178_v14 }
  0x18   : > { %809 = vmatprep.mubr.msk.f32.mxu1 %vm199_vm0, %v186_v15 }
  0x1a   : > { %798 = vmatmul.mubr.msk.f32.gmra.mrb[4].mxu0 %vm199_vm0, %v179_v16 }
  0x1b   : > { %810 = vmatmul.mubr.msk.f32.gmra.mrb[4].mxu1 %vm199_vm0, %v187_v17  ;;  %800 = vmatprep.mubr.msk.f32.mxu0 %vm199_vm0, %v180_v18 }
  0x1c   : > { %812 = vmatprep.mubr.msk.f32.mxu1 %vm199_vm0, %v188_v19 }
  0x1e   : > { %801 = vmatmul.mubr.msk.f32.gmra.mrb[6].mxu0 %vm199_vm0, %v181_v20 }
  0x1f   : > { %813 = vmatmul.mubr.msk.f32.gmra.mrb[6].mxu1 %vm199_vm0, %v189_v21 }
  0xe5   : > { %v793_v23 = vpop.f32.mrb[0].mxu0 }
  0xe6   : > { %v805_v24 = vpop.f32.mrb[0].mxu1  ;;  %v320_v25 = vadd.f32 %v793_v23, %v992_v22  ;;  %v314_v27 = vpop.f32.mrb[1].mxu0 }
  0xe7   : > { %v360_v26 = vadd.f32 %v805_v24, %v992_v22  ;;  %v354_v28 = vpop.f32.mrb[1].mxu1  ;;  %v315_v29 = vadd.f32 %v992_v22, %v314_v27 }
  0xe8   : > { %835 = vtanh.f32 %v320_v25  ;;  %v355_v30 = vadd.f32 %v992_v22, %v354_v28 }
  0xe9   : > { %837 = vtanh.f32 %v360_v26  ;;  %v796_v31 = vpop.f32.mrb[2].mxu0 }
  0xea   : > { %v808_v32 = vpop.f32.mrb[2].mxu1  ;;  %839 = vtanh.f32 %v315_v29  ;;  %v330_v33 = vadd.f32 %v796_v31, %v992_v22  ;;  %v324_v34 = vpop.f32.mrb[3].mxu0 }
  0xeb   : > { %v370_v35 = vadd.f32 %v808_v32, %v992_v22  ;;  %v364_v36 = vpop.f32.mrb[3].mxu1  ;;  %v325_v42 = vadd.f32 %v992_v22, %v324_v34 }
  0xec   : > { %841 = vtanh.f32 %v330_v33  ;;  %v365_v39 = vadd.f32 %v992_v22, %v364_v36 }
  0xed   : > { %843 = vtanh.f32 %v355_v30  ;;  %v799_v37 = vpop.f32.mrb[4].mxu0 }
  0xee   : > { %v811_v38 = vpop.f32.mrb[4].mxu1  ;;  %845 = vtanh.f32 %v370_v35  ;;  %v334_v40 = vpop.f32.mrb[5].mxu0  ;;  %v340_v44 = vadd.f32 %v799_v37, %v992_v22 }
  0xef   : > { %v374_v41 = vpop.f32.mrb[5].mxu1  ;;  %v335_v43 = vadd.f32 %v992_v22, %v334_v40  ;;  %847 = vtanh.f32 %v365_v39  ;;  %v380_v55 = vadd.f32 %v811_v38, %v992_v22 }
  0xf0   : > { %849 = vtanh.f32 %v325_v42  ;;  %v375_v54 = vadd.f32 %v992_v22, %v374_v41 }
  0xf1   : > { %v802_v45 = vpop.f32.mrb[6].mxu0  ;;  %851 = vtanh.f32 %v335_v43 }
  0xf2   : > { %v814_v46 = vpop.f32.mrb[6].mxu1  ;;  %v1004_v47 = vpop.eup %835  ;;  %853 = vtanh.f32 %v340_v44  ;;  %v350_v62 = vadd.f32 %v802_v45, %v992_v22 }
  0xf3   : > { %v344_v48 = vpop.f32.mrb[7].mxu0  ;;  %v384_v49 = vpop.f32.mrb[7].mxu1  ;;  %v413_v51 = vsel %vm409_vm1, %v1004_v47, 0.0  ;;  %855 = vtanh.f32 %v375_v54  ;;  %v390_v4 = vadd.f32 %v814_v46, %v992_v22 }
  0xf4   : > { %v1006_v50 = vpop.eup %837  ;;  %414 = vadd.xlane.f32.xlu0 %v413_v51  ;;  %v345_v61 = vadd.f32 %v992_v22, %v344_v48  ;;  %857 = vtanh.f32 %v380_v55  ;;  %v385_v2 = vadd.f32 %v992_v22, %v384_v49 }
  0xf5   : > { %v1010_v52 = vpop.eup %839  ;;  %v437_v53 = vsel %vm409_vm1, %v1006_v50, 0.0 }
  0xf6   : > { %438 = vadd.xlane.f32.xlu1 %v437_v53  ;;  %v1016_v56 = vpop.eup %841  ;;  %v410_v59 = vsel %vm409_vm1, %v1010_v52, 0.0  ;;  %859 = vtanh.f32 %v345_v61 }
  0xf7   : > { %v1018_v57 = vpop.eup %843  ;;  %v419_v58 = vsel %vm409_vm1, %v1016_v56, 0.0  ;;  %861 = vtanh.f32 %v350_v62 }
  0xf8   : > { %v1024_v60 = vpop.eup %845  ;;  %411 = vadd.xlane.f32.xlu0 %v410_v59  ;;  %v434_v0 = vsel %vm409_vm1, %v1018_v57, 0.0  ;;  %863 = vtanh.f32 %v385_v2 }
  0xf9   : > { %v443_v63 = vsel %vm409_vm1, %v1024_v60, 0.0  ;;  %v1032_v1 = vpop.eup %847  ;;  %865 = vtanh.f32 %v390_v4 }
  0xfa   : > { %420 = vadd.xlane.f32.xlu1 %v419_v58  ;;  %v1035_v3 = vpop.eup %849  ;;  %v440_v7 = vsel %vm409_vm1, %v1032_v1, 0.0 }
  0xfb   : > { %v1038_v5 = vpop.eup %851  ;;  %v416_v8 = vsel %vm409_vm1, %v1035_v3, 0.0 }
  0xfc   : > { %435 = vadd.xlane.f32.xlu0 %v434_v0  ;;  %v1040_v6 = vpop.eup %853  ;;  %v422_v9 = vsel %vm409_vm1, %v1038_v5, 0.0 }
  0xfd   : > { %v1048_v10 = vpop.eup %855  ;;  %v425_v11 = vsel %vm409_vm1, %v1040_v6, 0.0 }
  0xfe   : > { %444 = vadd.xlane.f32.xlu1 %v443_v63  ;;  %v1052_v12 = vpop.eup %857  ;;  %v446_v13 = vsel %vm409_vm1, %v1048_v10, 0.0 }
  0xff   : > { %v449_v15 = vsel %vm409_vm1, %v1052_v12, 0.0 }
 0x100   : > { %441 = vadd.xlane.f32.xlu0 %v440_v7  ;;  %v1056_v14 = vpop.eup %859 }
 0x101   : > { %v1060_v16 = vpop.eup %861  ;;  %v428_v17 = vsel %vm409_vm1, %v1056_v14, 0.0 }
 0x102   : > { %417 = vadd.xlane.f32.xlu1 %v416_v8  ;;  %v1064_v18 = vpop.eup %863  ;;  %v431_v19 = vsel %vm409_vm1, %v1060_v16, 0.0 }
 0x103   : > { %v1068_v20 = vpop.eup %865  ;;  %v452_v21 = vsel %vm409_vm1, %v1064_v18, 0.0 }
 0x104   : > { %423 = vadd.xlane.f32.xlu0 %v422_v9  ;;  %v455_v22 = vsel %vm409_vm1, %v1068_v20, 0.0 }
 0x106   : > { %426 = vadd.xlane.f32.xlu1 %v425_v11 }
 0x108   : > { %447 = vadd.xlane.f32.xlu0 %v446_v13 }
 0x10a   : > { %450 = vadd.xlane.f32.xlu1 %v449_v15 }
 0x10c   : > { %429 = vadd.xlane.f32.xlu0 %v428_v17 }
 0x10e   : > { %432 = vadd.xlane.f32.xlu1 %v431_v19 }
 0x110   : > { %453 = vadd.xlane.f32.xlu0 %v452_v21 }
 0x112   : > { %456 = vadd.xlane.f32.xlu1 %v455_v22 }
 0x181   : > { %v415_v23 = vpop.xlane.xlu0 %414 }
 0x182   : > { %v460_v25 = vmul.f32 0.015625, %v415_v23 }
 0x183   : > { %v439_v24 = vpop.xlane.xlu1 %438 }
 0x184   : > { %v468_v26 = vmul.f32 0.015625, %v439_v24  ;;  %v1075_v27 = vsub.f32 %v1004_v47, %v460_v25 }
 0x185   : > { %v412_v29 = vpop.xlane.xlu0 %411 }
 0x186   : > { %v1078_v28 = vsub.f32 %v1006_v50, %v468_v26  ;;  %v459_v31 = vmul.f32 0.015625, %v412_v29  ;;  %v492_v32 = vmul.f32 %v1075_v27, %v1075_v27 }
 0x187   : > { %v421_v30 = vpop.xlane.xlu1 %420 }
 0x188   : > { %v462_v33 = vmul.f32 0.015625, %v421_v30  ;;  %v1083_v34 = vsub.f32 %v1010_v52, %v459_v31  ;;  %v510_v35 = vsel %vm409_vm1, %v492_v32, 0.0  ;;  %v500_v36 = vmul.f32 %v1078_v28, %v1078_v28 }
 0x189   : > { %511 = vadd.xlane.f32.xlu1 %v510_v35  ;;  %v436_v38 = vpop.xlane.xlu0 %435 }
 0x18a   : > { %v1089_v37 = vsub.f32 %v1016_v56, %v462_v33  ;;  %v467_v40 = vmul.f32 0.015625, %v436_v38  ;;  %v491_v41 = vmul.f32 %v1083_v34, %v1083_v34  ;;  %v534_v44 = vsel %vm409_vm1, %v500_v36, 0.0 }
 0x18b   : > { %v445_v39 = vpop.xlane.xlu1 %444 }
 0x18c   : > { %v470_v42 = vmul.f32 0.015625, %v445_v39  ;;  %v1094_v43 = vsub.f32 %v1018_v57, %v467_v40  ;;  %v507_v45 = vsel %vm409_vm1, %v491_v41, 0.0  ;;  %v494_v46 = vmul.f32 %v1089_v37, %v1089_v37 }
 0x18d   : > { %535 = vadd.xlane.f32.xlu1 %v534_v44  ;;  %508 = vadd.xlane.f32.xlu0 %v507_v45  ;;  %v442_v48 = vpop.xlane.xlu0 %441 }
 0x18e   : > { %v1101_v47 = vsub.f32 %v1024_v60, %v470_v42  ;;  %v469_v50 = vmul.f32 0.015625, %v442_v48  ;;  %v499_v51 = vmul.f32 %v1094_v43, %v1094_v43  ;;  %v516_v53 = vsel %vm409_vm1, %v494_v46, 0.0 }
 0x18f   : > { %v418_v49 = vpop.xlane.xlu1 %417 }
 0x190   : > { %v461_v52 = vmul.f32 0.015625, %v418_v49  ;;  %v531_v54 = vsel %vm409_vm1, %v499_v51, 0.0  ;;  %v502_v55 = vmul.f32 %v1101_v47, %v1101_v47  ;;  %v1113_v57 = vsub.f32 %v1032_v1, %v469_v50 }
 0x191   : > { %517 = vadd.xlane.f32.xlu1 %v516_v53  ;;  %532 = vadd.xlane.f32.xlu0 %v531_v54  ;;  %v424_v58 = vpop.xlane.xlu0 %423 }
 0x192   : > { %v1110_v56 = vsub.f32 %v1035_v3, %v461_v52  ;;  %v463_v60 = vmul.f32 0.015625, %v424_v58  ;;  %v540_v63 = vsel %vm409_vm1, %v502_v55, 0.0  ;;  %v501_v4 = vmul.f32 %v1113_v57, %v1113_v57 }
 0x193   : > { %v427_v59 = vpop.xlane.xlu1 %426 }
 0x194   : > { %v464_v61 = vmul.f32 0.015625, %v427_v59  ;;  %v493_v62 = vmul.f32 %v1110_v56, %v1110_v56  ;;  %v1122_v2 = vsub.f32 %v1038_v5, %v463_v60  ;;  %v537_v15 = vsel %vm409_vm1, %v501_v4, 0.0 }
 0x195   : > { %541 = vadd.xlane.f32.xlu1 %v540_v63  ;;  %v448_v3 = vpop.xlane.xlu0 %447 }
 0x196   : > { %v1119_v0 = vsub.f32 %v1040_v6, %v464_v61  ;;  %v513_v1 = vsel %vm409_vm1, %v493_v62, 0.0  ;;  %v471_v8 = vmul.f32 0.015625, %v448_v3  ;;  %v495_v19 = vmul.f32 %v1122_v2, %v1122_v2 }
 0x197   : > { %v451_v7 = vpop.xlane.xlu1 %450  ;;  %514 = vadd.xlane.f32.xlu0 %v513_v1 }
 0x198   : > { %v472_v9 = vmul.f32 0.015625, %v451_v7  ;;  %v496_v11 = vmul.f32 %v1119_v0, %v1119_v0  ;;  %v1130_v6 = vsub.f32 %v1048_v10, %v471_v8  ;;  %v519_v29 = vsel %vm409_vm1, %v495_v19, 0.0  ;;  %v1173_v7 = vld [vmem:[%s1272_s2 + $0x1] ss:$0 sm:$0xff] }
 0x199   : > { %v430_v17 = vpop.xlane.xlu0 %429 }
 0x19a   : > { %v1133_v5 = vsub.f32 %v1052_v12, %v472_v9  ;;  %v522_v13 = vsel %vm409_vm1, %v496_v11, 0.0  ;;  %v465_v22 = vmul.f32 0.015625, %v430_v17  ;;  %v503_v12 = vmul.f32 %v1130_v6, %v1130_v6 }
 0x19b   : > { %523 = vadd.xlane.f32.xlu1 %v522_v13  ;;  %v433_v21 = vpop.xlane.xlu1 %432  ;;  %538 = vadd.xlane.f32.xlu0 %v537_v15  ;;  %v1179_v13 = vld [vmem:[%s1272_s2 + $0x2] ss:$0 sm:$0xff] }
 0x19c   : > { %v466_v23 = vmul.f32 0.015625, %v433_v21  ;;  %v504_v10 = vmul.f32 %v1133_v5, %v1133_v5  ;;  %v1147_v25 = vsub.f32 %v1056_v14, %v465_v22  ;;  %v543_v36 = vsel %vm409_vm1, %v503_v12, 0.0 }
 0x19d   : > { %v454_v30 = vpop.xlane.xlu0 %453 }
 0x19e   : > { %v1144_v24 = vsub.f32 %v1060_v16, %v466_v23  ;;  %v546_v26 = vsel %vm409_vm1, %v504_v10, 0.0  ;;  %v473_v32 = vmul.f32 0.015625, %v454_v30  ;;  %v497_v39 = vmul.f32 %v1147_v25, %v1147_v25 }
 0x19f   : > { %547 = vadd.xlane.f32.xlu1 %v546_v26  ;;  %v457_v31 = vpop.xlane.xlu1 %456  ;;  %520 = vadd.xlane.f32.xlu0 %v519_v29 }
 0x1a0   : > { %v474_v33 = vmul.f32 0.015625, %v457_v31  ;;  %v498_v35 = vmul.f32 %v1144_v24, %v1144_v24  ;;  %v1158_v14 = vsub.f32 %v1064_v18, %v473_v32  ;;  %v525_v42 = vsel %vm409_vm1, %v497_v39, 0.0 }
 0x1a2   : > { %v1155_v16 = vsub.f32 %v1068_v20, %v474_v33  ;;  %v528_v38 = vsel %vm409_vm1, %v498_v35, 0.0  ;;  %v505_v20 = vmul.f32 %v1158_v14, %v1158_v14 }
 0x1a3   : > { %529 = vadd.xlane.f32.xlu1 %v528_v38  ;;  %544 = vadd.xlane.f32.xlu0 %v543_v36 }
 0x1a4   : > { %v506_v40 = vmul.f32 %v1155_v16, %v1155_v16  ;;  %v549_v18 = vsel %vm409_vm1, %v505_v20, 0.0 }
 0x1a6   : > { %v552_v41 = vsel %vm409_vm1, %v506_v40, 0.0 }
 0x1a7   : > { %553 = vadd.xlane.f32.xlu1 %v552_v41  ;;  %526 = vadd.xlane.f32.xlu0 %v525_v42 }
 0x1ab   : > { %550 = vadd.xlane.f32.xlu0 %v549_v18 }
 0x216   : > { %v512_v44 = vpop.xlane.xlu1 %511 }
 0x217   : > { %v556_v45 = vmul.f32 0.015625, %v512_v44 }
 0x219   : > { %v572_v46 = vadd.f32 1e-05, %v556_v45 }
 0x21a   : > { %v536_v48 = vpop.xlane.xlu1 %535  ;;  %v509_v49 = vpop.xlane.xlu0 %508 }
 0x21b   : > { %867 = vrsqrt.f32 %v572_v46  ;;  %v564_v50 = vmul.f32 0.015625, %v536_v48  ;;  %v555_v51 = vmul.f32 0.015625, %v509_v49 }
 0x21d   : > { %v580_v52 = vadd.f32 1e-05, %v564_v50  ;;  %v571_v53 = vadd.f32 1e-05, %v555_v51 }
 0x21e   : > { %v518_v54 = vpop.xlane.xlu1 %517  ;;  %v533_v55 = vpop.xlane.xlu0 %532 }
 0x21f   : > { %869 = vrsqrt.f32 %v580_v52  ;;  %v558_v58 = vmul.f32 0.015625, %v518_v54  ;;  %v563_v59 = vmul.f32 0.015625, %v533_v55 }
 0x220   : > { %871 = vrsqrt.f32 %v571_v53 }
 0x221   : > { %v574_v60 = vadd.f32 1e-05, %v558_v58  ;;  %v579_v61 = vadd.f32 1e-05, %v563_v59 }
 0x222   : > { %v542_v62 = vpop.xlane.xlu1 %541 }
 0x223   : > { %873 = vrsqrt.f32 %v574_v60  ;;  %v566_v63 = vmul.f32 0.015625, %v542_v62 }
 0x224   : > { %v515_v1 = vpop.xlane.xlu0 %514  ;;  %875 = vrsqrt.f32 %v579_v61 }
 0x225   : > { %v557_v3 = vmul.f32 0.015625, %v515_v1  ;;  %v868_v4 = vpop.eup %867  ;;  %v582_v8 = vadd.f32 1e-05, %v566_v63 }
 0x226   : > { %v604_v9 = vmul.f32 %v868_v4, %v1075_v27 }
 0x227   : > { %v573_v11 = vadd.f32 1e-05, %v557_v3  ;;  %877 = vrsqrt.f32 %v582_v8 }
 0x228   : > { %v524_v15 = vpop.xlane.xlu1 %523  ;;  %v539_v17 = vpop.xlane.xlu0 %538  ;;  %v625_v19 = vmul.f32 %v1173_v7, %v604_v9 }
 0x229   : > { %879 = vrsqrt.f32 %v573_v11  ;;  %v560_v21 = vmul.f32 0.015625, %v524_v15  ;;  %v565_v22 = vmul.f32 0.015625, %v539_v17  ;;  %v870_v23 = vpop.eup %869 }
 0x22a   : > { %v872_v27 = vpop.eup %871  ;;  %v646_v10 = vadd.f32 %v1179_v13, %v625_v19  ;;  %v612_v12 = vmul.f32 %v870_v23, %v1078_v28 }
 0x22b   : > { %v576_v26 = vadd.f32 1e-05, %v560_v21  ;;  %v581_v29 = vadd.f32 1e-05, %v565_v22  ;;  %v603_v30 = vmul.f32 %v872_v27, %v1083_v34 }
 0x22c   : > { %v548_v31 = vpop.xlane.xlu1 %547  ;;  %v521_v32 = vpop.xlane.xlu0 %520  ;;  %662 = vst.msk [vmem:[%s1187_s8 + $0x8] sm:$0xff] %vm409_vm1, %v646_v10  ;;  %v633_v33 = vmul.f32 %v1173_v7, %v612_v12 }
 0x22d   : > { %881 = vrsqrt.f32 %v576_v26  ;;  %v568_v35 = vmul.f32 0.015625, %v548_v31  ;;  %v559_v36 = vmul.f32 0.015625, %v521_v32  ;;  %v874_v38 = vpop.eup %873  ;;  %v624_v39 = vmul.f32 %v1173_v7, %v603_v30 }
 0x22e   : > { %883 = vrsqrt.f32 %v581_v29  ;;  %v876_v28 = vpop.eup %875  ;;  %v654_v40 = vadd.f32 %v1179_v13, %v633_v33  ;;  %v606_v34 = vmul.f32 %v874_v38, %v1089_v37 }
 0x22f   : > { %v584_v41 = vadd.f32 1e-05, %v568_v35  ;;  %v575_v42 = vadd.f32 1e-05, %v559_v36  ;;  %v645_v20 = vadd.f32 %v1179_v13, %v624_v39  ;;  %v611_v18 = vmul.f32 %v876_v28, %v1094_v43 }
 0x230   : > { %v530_v44 = vpop.xlane.xlu1 %529  ;;  %v545_v45 = vpop.xlane.xlu0 %544  ;;  %670 = vst.msk [vmem:[%s1187_s8 + $0x48] sm:$0xff] %vm409_vm1, %v654_v40  ;;  %v627_v46 = vmul.f32 %v1173_v7, %v606_v34 }
 0x231   : > { %885 = vrsqrt.f32 %v584_v41  ;;  %v562_v48 = vmul.f32 0.015625, %v530_v44  ;;  %v567_v49 = vmul.f32 0.015625, %v545_v45  ;;  %v878_v50 = vpop.eup %877  ;;  %661 = vst.msk [vmem:[%s1187_s8] sm:$0xff] %vm409_vm1, %v645_v20  ;;  %v632_v37 = vmul.f32 %v1173_v7, %v611_v18 }
 0x232   : > { %887 = vrsqrt.f32 %v575_v42  ;;  %v648_v43 = vadd.f32 %v1179_v13, %v627_v46  ;;  %v614_v52 = vmul.f32 %v878_v50, %v1101_v47 }
 0x233   : > { %v880_v51 = vpop.eup %879  ;;  %v578_v53 = vadd.f32 1e-05, %v562_v48  ;;  %v583_v54 = vadd.f32 1e-05, %v567_v49  ;;  %v653_v55 = vadd.f32 %v1179_v13, %v632_v37 }
 0x234   : > { %v605_v58 = vmul.f32 %v880_v51, %v1110_v56  ;;  %v554_v59 = vpop.xlane.xlu1 %553  ;;  %v527_v60 = vpop.xlane.xlu0 %526  ;;  %664 = vst.msk [vmem:[%s1187_s8 + $0x18] sm:$0xff] %vm409_vm1, %v648_v43  ;;  %v635_v61 = vmul.f32 %v1173_v7, %v614_v52 }
 0x235   : > { %889 = vrsqrt.f32 %v578_v53  ;;  %v570_v62 = vmul.f32 0.015625, %v554_v59  ;;  %v561_v63 = vmul.f32 0.015625, %v527_v60  ;;  %669 = vst.msk [vmem:[%s1187_s8 + $0x40] sm:$0xff] %vm409_vm1, %v653_v55 }
 0x236   : > { %v626_v47 = vmul.f32 %v1173_v7, %v605_v58  ;;  %891 = vrsqrt.f32 %v583_v54  ;;  %v656_v3 = vadd.f32 %v1179_v13, %v635_v61 }
 0x237   : > { %v882_v1 = vpop.eup %881  ;;  %v586_v56 = vadd.f32 1e-05, %v570_v62  ;;  %v577_v4 = vadd.f32 1e-05, %v561_v63 }
 0x238   : > { %v884_v8 = vpop.eup %883  ;;  %v647_v9 = vadd.f32 %v1179_v13, %v626_v47  ;;  %v608_v11 = vmul.f32 %v882_v1, %v1119_v0  ;;  %v551_v15 = vpop.xlane.xlu0 %550  ;;  %672 = vst.msk [vmem:[%s1187_s8 + $0x58] sm:$0xff] %vm409_vm1, %v656_v3 }
 0x239   : > { %v613_v17 = vmul.f32 %v884_v8, %v1113_v57  ;;  %893 = vrsqrt.f32 %v586_v56  ;;  %v569_v19 = vmul.f32 0.015625, %v551_v15 }
 0x23a   : > { %663 = vst.msk [vmem:[%s1187_s8 + $0x10] sm:$0xff] %vm409_vm1, %v647_v9  ;;  %v629_v21 = vmul.f32 %v1173_v7, %v608_v11  ;;  %895 = vrsqrt.f32 %v577_v4 }
 0x23b   : > { %v886_v22 = vpop.eup %885  ;;  %v634_v23 = vmul.f32 %v1173_v7, %v613_v17  ;;  %v585_v27 = vadd.f32 1e-05, %v569_v19 }
 0x23c   : > { %v888_v10 = vpop.eup %887  ;;  %v650_v0 = vadd.f32 %v1179_v13, %v629_v21  ;;  %v616_v12 = vmul.f32 %v886_v22, %v1133_v5 }
 0x23d   : > { %v655_v57 = vadd.f32 %v1179_v13, %v634_v23  ;;  %v607_v26 = vmul.f32 %v888_v10, %v1122_v2  ;;  %897 = vrsqrt.f32 %v585_v27 }
 0x23e   : > { %666 = vst.msk [vmem:[%s1187_s8 + $0x28] sm:$0xff] %vm409_vm1, %v650_v0  ;;  %v637_v29 = vmul.f32 %v1173_v7, %v616_v12 }
 0x23f   : > { %v890_v30 = vpop.eup %889  ;;  %671 = vst.msk [vmem:[%s1187_s8 + $0x50] sm:$0xff] %vm409_vm1, %v655_v57  ;;  %v628_v31 = vmul.f32 %v1173_v7, %v607_v26 }
 0x240   : > { %v892_v32 = vpop.eup %891  ;;  %v658_v33 = vadd.f32 %v1179_v13, %v637_v29  ;;  %v610_v5 = vmul.f32 %v890_v30, %v1144_v24 }
 0x241   : > { %v649_v35 = vadd.f32 %v1179_v13, %v628_v31  ;;  %v615_v2 = vmul.f32 %v892_v32, %v1130_v6 }
 0x242   : > { %674 = vst.msk [vmem:[%s1187_s8 + $0x68] sm:$0xff] %vm409_vm1, %v658_v33  ;;  %v631_v36 = vmul.f32 %v1173_v7, %v610_v5 }
 0x243   : > { %v894_v38 = vpop.eup %893  ;;  %665 = vst.msk [vmem:[%s1187_s8 + $0x20] sm:$0xff] %vm409_vm1, %v649_v35  ;;  %v636_v39 = vmul.f32 %v1173_v7, %v615_v2 }
 0x244   : > { %v896_v28 = vpop.eup %895  ;;  %v652_v40 = vadd.f32 %v1179_v13, %v631_v36  ;;  %v618_v24 = vmul.f32 %v894_v38, %v1155_v16 }
 0x245   : > { %v657_v34 = vadd.f32 %v1179_v13, %v636_v39  ;;  %v609_v6 = vmul.f32 %v896_v28, %v1147_v25 }
 0x246   : > { %668 = vst.msk [vmem:[%s1187_s8 + $0x38] sm:$0xff] %vm409_vm1, %v652_v40  ;;  %v639_v41 = vmul.f32 %v1173_v7, %v618_v24 }
 0x247   : > { %v898_v42 = vpop.eup %897  ;;  %673 = vst.msk [vmem:[%s1187_s8 + $0x60] sm:$0xff] %vm409_vm1, %v657_v34  ;;  %v630_v20 = vmul.f32 %v1173_v7, %v609_v6 }
 0x248   : > { %v660_v18 = vadd.f32 %v1179_v13, %v639_v41  ;;  %v617_v44 = vmul.f32 %v898_v42, %v1158_v14 }
 0x249   : > { %v651_v45 = vadd.f32 %v1179_v13, %v630_v20 }
 0x24a   : > { %676 = vst.msk [vmem:[%s1187_s8 + $0x78] sm:$0xff] %vm409_vm1, %v660_v18  ;;  %v638_v16 = vmul.f32 %v1173_v7, %v617_v44 }
 0x24b   : > { %667 = vst.msk [vmem:[%s1187_s8 + $0x30] sm:$0xff] %vm409_vm1, %v651_v45 }
 0x24c   : > { %v659_v25 = vadd.f32 %v1179_v13, %v638_v16 }
 0x24e   : > { %675 = vst.msk [vmem:[%s1187_s8 + $0x70] sm:$0xff] %vm409_vm1, %v659_v25 }
 0x24f PF: > { %s13_s12 = sadd.s32 1, %s905_s12  }
 0x250   : > { %p10_p4 = scmp.ge.s32.totalorder %s13_s12, 4  }
 0x252   :  { %12 = sbr.rel (!%p10_p4) target bundleno = 1 (0x1), region = 62 }

</bundles_post_ra>
